<compile_context>
chip_gen: v6e
topology: v6e:2x2x1
jax: 0.10.0
libtpu: 0.0.40
codegen_flags: <defaults>
</compile_context>

<pallas_src>
import jax
import jax.numpy as jnp
from jax import lax
from jax.experimental import pallas as pl
from jax.experimental.pallas import tpu as pltpu

_PREC = lax.Precision.HIGHEST  # full-f32 MXU passes for f32 operands


# --------------------------------------------------------------------------- #
# Kernels
# --------------------------------------------------------------------------- #
def _dispatch_kernel(x_ref, phit_ref, slots_ref, m_scr, d_scr, acc_scr):
    """Phase 1a: online dispatch softmax over m (transposed layout) + slot accum."""
    mi = pl.program_id(1)

    @pl.when(mi == 0)
    def _init():
        m_scr[...] = jnp.full_like(m_scr, -jnp.inf)
        d_scr[...] = jnp.zeros_like(d_scr)
        acc_scr[...] = jnp.zeros_like(acc_scr)

    x = x_ref[0]            # (tm, d)
    phit = phit_ref[...]    # (n*p, d)

    # logits^T for this m-tile: (n*p, tm) — slots on sublanes, tokens on lanes.
    logits_t = lax.dot_general(
        phit, x, dimension_numbers=(((1,), (1,)), ((), ())),
        preferred_element_type=jnp.float32, precision=_PREC)

    tile_max = jnp.max(logits_t, axis=1, keepdims=True)          # (n*p, 1)
    new_max = jnp.maximum(m_scr[...], tile_max)
    alpha = jnp.exp(m_scr[...] - new_max)                        # (n*p, 1)
    p_t = jnp.exp(logits_t - new_max)                            # (n*p, tm)
    d_scr[...] = alpha * d_scr[...] + jnp.sum(p_t, axis=1, keepdims=True)
    # slots accumulation: plain matmul, no transposes.
    acc_scr[...] = alpha * acc_scr[...] + jnp.dot(
        p_t, x.astype(jnp.float32),
        preferred_element_type=jnp.float32, precision=_PREC)     # (n*p, d)
    m_scr[...] = new_max

    @pl.when(mi == pl.num_programs(1) - 1)
    def _finalize():
        # exact division (once per batch) — do not use the approx reciprocal here.
        slots_ref[0] = (acc_scr[...] / d_scr[...]).astype(slots_ref.dtype)


def _expert_kernel(s_ref, w_ref, b_ref, eo_ref):
    """Phase 1b: one expert's linear layer applied to all batches' slots at once."""
    s = s_ref[0]                                                  # (b*p, d)
    w = w_ref[0]                                                  # (d, tf)
    eo = jnp.dot(s, w, preferred_element_type=jnp.float32, precision=_PREC)
    eo_ref[0] = (eo + b_ref[0]).astype(eo_ref.dtype)              # (b*p, tf)


def _combine_kernel(x_ref, phi_ref, eo_ref, o_ref):
    """Phase 2: per-token combine softmax over the slot axis + output mixing."""
    x = x_ref[0]                                                  # (tm, d)
    logits = jnp.dot(x, phi_ref[...],
                     preferred_element_type=jnp.float32, precision=_PREC)  # (tm, n*p)
    c_max = jnp.max(logits, axis=-1, keepdims=True)
    c_exp = jnp.exp(logits - c_max)
    combine = c_exp / jnp.sum(c_exp, axis=-1, keepdims=True)      # exact normalization
    y = jnp.dot(combine, eo_ref[0].astype(jnp.float32),
                preferred_element_type=jnp.float32, precision=_PREC)       # (tm, f)
    o_ref[0] = y.astype(o_ref.dtype)


# --------------------------------------------------------------------------- #
# Tiling / compiler-parameter helpers
# --------------------------------------------------------------------------- #
def _vmem_limit_bytes():
    """Generation-aware VMEM budget (~80% of physical; v7x: ~51 MiB, v5e/v6e: ~100 MiB)."""
    try:
        cap = getattr(pltpu.get_tpu_info(), "vmem_capacity_bytes", None)
        if cap:
            return min(int(cap * 0.8), 112 * 1024 * 1024)
    except Exception:
        pass
    return None


def _pick_m_tile(m, d, itemsize, vmem_limit):
    """Biggest sublane-aligned m-tile that divides m and fits the VMEM budget."""
    budget = (vmem_limit or 32 * 1024 * 1024) // 2   # headroom for phi / scratch / output
    for t in (2048, 1024, 512, 256, 128, 64, 32, 16, 8):
        if m % t == 0 and 3 * t * d * itemsize <= budget:
            return t
    # TODO(synk): pad m (masking padded rows out of the dispatch softmax) instead of
    # falling back to a single tile for awkward sequence lengths.
    return m


def _pick_f_tile(f):
    for t in (512, 256, 128):
        if f % t == 0:
            return t
    return f


def _mosaic_params(dims, vmem_limit):
    kw = dict(dimension_semantics=dims)
    if vmem_limit is not None:
        kw["vmem_limit_bytes"] = int(vmem_limit)
    return pltpu.CompilerParams(**kw)


# --------------------------------------------------------------------------- #
# Wrapper
# --------------------------------------------------------------------------- #
def soft_moe_pallas(x, phi, w, bias, *, num_experts, slots_per_expert, tm=None):
    b, m, d = x.shape
    n, d_in, f = w.shape
    p = slots_per_expert
    assert d == d_in and n == num_experts
    assert phi.shape == (d, n, p)
    assert bias.shape == (n, f)
    np_slots = n * p
    bp = b * p

    phi_flat = phi.reshape(d, np_slots)      # (d, n*p)  for phase 2
    phi_t = jnp.transpose(phi_flat)          # (n*p, d)  for phase 1a (param-sized, free)

    vmem_limit = _vmem_limit_bytes()
    if tm is None:
        tm = _pick_m_tile(m, d, x.dtype.itemsize, vmem_limit)
    assert m % tm == 0, "sequence length must be divisible by the m-tile"
    n_mt = m // tm
    tf = _pick_f_tile(f)
    n_ft = f // tf

    # ---------------- Phase 1a: dispatch softmax + slots -> (b, n*p, d) -------------
    slots = pl.pallas_call(
        _dispatch_kernel,
        out_shape=jax.ShapeDtypeStruct((b, np_slots, d), jnp.float32),
        grid_spec=pltpu.PrefetchScalarGridSpec(
            num_scalar_prefetch=0,
            grid=(b, n_mt),                               # m (reduction) axis last
            in_specs=[
                pl.BlockSpec((1, tm, d), lambda bi, mi: (bi, mi, 0)),
                pl.BlockSpec((np_slots, d), lambda bi, mi: (0, 0)),
            ],
            out_specs=pl.BlockSpec((1, np_slots, d), lambda bi, mi: (bi, 0, 0)),
            scratch_shapes=[
                pltpu.VMEM((np_slots, 1), jnp.float32),   # running max
                pltpu.VMEM((np_slots, 1), jnp.float32),   # running denominator
                pltpu.VMEM((np_slots, d), jnp.float32),   # slot accumulator
            ],
        ),
        compiler_params=_mosaic_params(("parallel", "arbitrary"), vmem_limit),
    )(x, phi_t)

    # Layout plumbing in plain XLA (cheap: n*p << m): stack batches per expert so the
    # expert matmul feeds M = b*p rows into the MXU.  (n, b*p, d)
    slots_r = slots.reshape(b, n, p, d).transpose(1, 0, 2, 3).reshape(n, bp, d)
    bias_r = bias.reshape(n, 1, f)

    # ---------------- Phase 1b: per-expert linear, weights streamed per (d, tf) tile
    expert_out_r = pl.pallas_call(
        _expert_kernel,
        out_shape=jax.ShapeDtypeStruct((n, bp, f), jnp.float32),
        grid_spec=pltpu.PrefetchScalarGridSpec(
            num_scalar_prefetch=0,
            grid=(n, n_ft),
            in_specs=[
                pl.BlockSpec((1, bp, d), lambda e, fj: (e, 0, 0)),
                pl.BlockSpec((1, d, tf), lambda e, fj: (e, 0, fj)),
                pl.BlockSpec((1, 1, tf), lambda e, fj: (e, 0, fj)),
            ],
            out_specs=pl.BlockSpec((1, bp, tf), lambda e, fj: (e, 0, fj)),
        ),
        compiler_params=_mosaic_params(("parallel", "parallel"), vmem_limit),
    )(slots_r, w, bias_r)

    # Back to per-batch, slot-major layout for the combine matmul: (b, n*p, f)
    expert_out = (expert_out_r.reshape(n, b, p, f)
                  .transpose(1, 0, 2, 3).reshape(b, np_slots, f))

    # ---------------- Phase 2: combine softmax + output -> (b, m, f) ----------------
    out = pl.pallas_call(
        _combine_kernel,
        out_shape=jax.ShapeDtypeStruct((b, m, f), x.dtype),
        grid_spec=pltpu.PrefetchScalarGridSpec(
            num_scalar_prefetch=0,
            grid=(b, n_mt),
            in_specs=[
                pl.BlockSpec((1, tm, d), lambda bi, mi: (bi, mi, 0)),
                pl.BlockSpec((d, np_slots), lambda bi, mi: (0, 0)),
                pl.BlockSpec((1, np_slots, f), lambda bi, mi: (bi, 0, 0)),
            ],
            out_specs=pl.BlockSpec((1, tm, f), lambda bi, mi: (bi, mi, 0)),
        ),
        compiler_params=_mosaic_params(("parallel", "parallel"), vmem_limit),
    )(x, phi_flat, expert_out)

    # TODO(synk): AuxLoss path (masks is not None and index == 7) is not implemented;
    # this matches the default masks=None / index != 7 behaviour (loss = 0.0).
    return out, 0.0


# --------------------------------------------------------------------------- #
# Pure-JAX reference (mirrors the PyTorch module)
# --------------------------------------------------------------------------- #
def soft_moe_reference(x, phi, w, bias, *, num_experts, slots_per_expert):
    logits = jnp.einsum("bmd,dnp->bmnp", x, phi, precision=_PREC)
    dispatch = jax.nn.softmax(logits, axis=1)
    b, m, n, p = logits.shape
    combine = jax.nn.softmax(logits.reshape(b, m, n * p), axis=-1).reshape(b, m, n, p)
    slots = jnp.einsum("bmd,bmnp->bnpd", x, dispatch, precision=_PREC)
    expert_out = (jnp.einsum("bnpd,ndf->bnpf", slots, w, precision=_PREC)
                  + bias[None, :, None, :])
    y = jnp.einsum("bnpf,bmnp->bmf", expert_out, combine, precision=_PREC)
    return y


if __name__ == "__main__":
    batch, seq, embed = 2, 8, 32           # b, m, d
    num_experts, slots_per_expert = 4, 2
    out_features = 32                      # f

    key = jax.random.PRNGKey(0)
    kx, kphi, kw, kb, kx2 = jax.random.split(key, 5)

    phi_bound = (6.0 / embed) ** 0.5
    phi = jax.random.uniform(kphi, (embed, num_experts, slots_per_expert),
                             minval=-phi_bound, maxval=phi_bound, dtype=jnp.float32)
    w_bound = (1.0 / embed) ** 0.5
    w = jax.random.uniform(kw, (num_experts, embed, out_features),
                           minval=-w_bound, maxval=w_bound, dtype=jnp.float32)
    bias = jax.random.uniform(kb, (num_experts, out_features),
                              minval=-w_bound, maxval=w_bound, dtype=jnp.float32)

    # Case 1: module-sized shapes (single m-tile per batch).
    x = jax.random.normal(kx, (batch, seq, embed), dtype=jnp.float32)
    y_kernel, loss = soft_moe_pallas(
        x, phi, w, bias,
        num_experts=num_experts, slots_per_expert=slots_per_expert)
    y_kernel = jax.block_until_ready(y_kernel)
    y_ref = soft_moe_reference(
        x, phi, w, bias,
        num_experts=num_experts, slots_per_expert=slots_per_expert)
    assert y_kernel.shape == (batch, seq, out_features)
    err = float(jnp.max(jnp.abs(y_kernel - y_ref)))
    assert err < 5e-3, f"mismatch vs reference: max abs err {err}"
    assert loss == 0.0

    # Case 2: longer sequence, multiple m-tiles (exercises the online dispatch softmax).
    x2 = jax.random.normal(kx2, (batch, 32, embed), dtype=jnp.float32)
    y2, _ = soft_moe_pallas(
        x2, phi, w, bias,
        num_experts=num_experts, slots_per_expert=slots_per_expert, tm=8)
    y2 = jax.block_until_ready(y2)
    y2_ref = soft_moe_reference(
        x2, phi, w, bias,
        num_experts=num_experts, slots_per_expert=slots_per_expert)
    err2 = float(jnp.max(jnp.abs(y2 - y2_ref)))
    assert err2 < 5e-3, f"mismatch vs reference (tiled m): max abs err {err2}"

    print("KERNEL_OK")
</pallas_src>

<mosaic_0001>
module attributes {stable_mosaic.version = 11 : i64} {
  func.func @_dispatch_kernel(%arg0: i32, %arg1: i32, %arg2: memref<1x8x32xf32, #tpu.memory_space<vmem>>, %arg3: memref<8x32xf32, #tpu.memory_space<vmem>>, %arg4: memref<1x8x32xf32, #tpu.memory_space<vmem>>, %arg5: memref<8x1xf32, #tpu.memory_space<vmem>>, %arg6: memref<8x1xf32, #tpu.memory_space<vmem>>, %arg7: memref<8x32xf32, #tpu.memory_space<vmem>>) attributes {dimension_semantics = [#tpu.dimension_semantics<parallel>, #tpu.dimension_semantics<arbitrary>], iteration_bounds = array<i64: 2, 1>, scalar_prefetch = 0 : i64, scratch_operands = 3 : i64, tpu.core_type = #tpu.core_type<tc>, window_params = [{transform_indices = @transform_0, window_bounds = array<i64: 1, 8, 32>}, {pipeline_mode = #tpu.pipeline_mode<synchronous>, transform_indices = @transform_1, window_bounds = array<i64: 8, 32>}, {transform_indices = @transform_2, window_bounds = array<i64: 1, 8, 32>}]} {
    %c0_i32 = arith.constant 0 : i32
    %0 = arith.cmpi eq, %arg1, %c0_i32 : i32
    %1 = arith.extui %0 : i1 to i32
    %c0_i32_0 = arith.constant 0 : i32
    %2 = arith.cmpi ne, %1, %c0_i32_0 : i32
    scf.if %2 {
      %cst_24 = arith.constant 0xFF800000 : f32
      %33 = vector.broadcast %cst_24 : f32 to vector<8x1xf32>
      %c0_25 = arith.constant 0 : index
      %c0_26 = arith.constant 0 : index
      %34 = vector.load %arg5[%c0_25, %c0_26] : memref<8x1xf32, #tpu.memory_space<vmem>>, vector<8x1xf32>
      tpu.vector_store %arg5[%c0_25, %c0_26], %33 {strides = array<i32>} : memref<8x1xf32, #tpu.memory_space<vmem>>, vector<8x1xf32>,
      %cst_27 = arith.constant 0.000000e+00 : f32
      %35 = vector.broadcast %cst_27 : f32 to vector<8x1xf32>
      %c0_28 = arith.constant 0 : index
      %c0_29 = arith.constant 0 : index
      %36 = vector.load %arg6[%c0_28, %c0_29] : memref<8x1xf32, #tpu.memory_space<vmem>>, vector<8x1xf32>
      tpu.vector_store %arg6[%c0_28, %c0_29], %35 {strides = array<i32>} : memref<8x1xf32, #tpu.memory_space<vmem>>, vector<8x1xf32>,
      %cst_30 = arith.constant 0.000000e+00 : f32
      %37 = vector.broadcast %cst_30 : f32 to vector<8x32xf32>
      %c0_31 = arith.constant 0 : index
      %c0_32 = arith.constant 0 : index
      %38 = vector.load %arg7[%c0_31, %c0_32] : memref<8x32xf32, #tpu.memory_space<vmem>>, vector<8x32xf32>
      tpu.vector_store %arg7[%c0_31, %c0_32], %37 {strides = array<i32>} : memref<8x32xf32, #tpu.memory_space<vmem>>, vector<8x32xf32>,
    } else {
    }
    %c0 = arith.constant 0 : index
    %c0_1 = arith.constant 0 : index
    %c0_2 = arith.constant 0 : index
    %3 = vector.load %arg2[%c0, %c0_1, %c0_2] : memref<1x8x32xf32, #tpu.memory_space<vmem>>, vector<1x8x32xf32>
    %4 = vector.shape_cast %3 : vector<1x8x32xf32> to vector<8x32xf32>
    %c0_3 = arith.constant 0 : index
    %c0_4 = arith.constant 0 : index
    %5 = vector.load %arg3[%c0_3, %c0_4] : memref<8x32xf32, #tpu.memory_space<vmem>>, vector<8x32xf32>
    %cst = arith.constant dense<0.000000e+00> : vector<8x8xf32>
    %6 = tpu.matmul %5, %4, %cst {dimension_numbers = #tpu.dot_dimension_numbers<[1], [1], [0], [0], [0, 0, 1, 0], [], []>, precision = #tpu.contract_precision<fp32>} : vector<8x32xf32>, vector<8x32xf32>, vector<8x8xf32> -> vector<8x8xf32>
    %cst_5 = arith.constant dense<0xFF800000> : vector<8xf32>
    %7 = vector.multi_reduction <maximumf>, %6, %cst_5 [1] : vector<8x8xf32> to vector<8xf32>
    %8 = vector.shape_cast %7 : vector<8xf32> to vector<8x1xf32>
    %c0_6 = arith.constant 0 : index
    %c0_7 = arith.constant 0 : index
    %9 = vector.load %arg5[%c0_6, %c0_7] : memref<8x1xf32, #tpu.memory_space<vmem>>, vector<8x1xf32>
    %10 = arith.maximumf %9, %8 : vector<8x1xf32>
    %c0_8 = arith.constant 0 : index
    %c0_9 = arith.constant 0 : index
    %11 = vector.load %arg5[%c0_8, %c0_9] : memref<8x1xf32, #tpu.memory_space<vmem>>, vector<8x1xf32>
    %12 = arith.subf %11, %10 : vector<8x1xf32>
    %13 = math.exp %12 : vector<8x1xf32>
    %14 = vector.broadcast %10 : vector<8x1xf32> to vector<8x8xf32>
    %15 = arith.subf %6, %14 : vector<8x8xf32>
    %16 = math.exp %15 : vector<8x8xf32>
    %c0_10 = arith.constant 0 : index
    %c0_11 = arith.constant 0 : index
    %17 = vector.load %arg6[%c0_10, %c0_11] : memref<8x1xf32, #tpu.memory_space<vmem>>, vector<8x1xf32>
    %18 = arith.mulf %13, %17 : vector<8x1xf32>
    %cst_12 = arith.constant dense<0.000000e+00> : vector<8xf32>
    %19 = vector.multi_reduction <add>, %16, %cst_12 [1] : vector<8x8xf32> to vector<8xf32>
    %20 = vector.shape_cast %19 : vector<8xf32> to vector<8x1xf32>
    %21 = arith.addf %18, %20 : vector<8x1xf32>
    %c0_13 = arith.constant 0 : index
    %c0_14 = arith.constant 0 : index
    %22 = vector.load %arg6[%c0_13, %c0_14] : memref<8x1xf32, #tpu.memory_space<vmem>>, vector<8x1xf32>
    tpu.vector_store %arg6[%c0_13, %c0_14], %21 {strides = array<i32>} : memref<8x1xf32, #tpu.memory_space<vmem>>, vector<8x1xf32>,
    %c0_15 = arith.constant 0 : index
    %c0_16 = arith.constant 0 : index
    %23 = vector.load %arg7[%c0_15, %c0_16] : memref<8x32xf32, #tpu.memory_space<vmem>>, vector<8x32xf32>
    %24 = vector.broadcast %13 : vector<8x1xf32> to vector<8x32xf32>
    %25 = arith.mulf %24, %23 : vector<8x32xf32>
    %cst_17 = arith.constant dense<0.000000e+00> : vector<8x32xf32>
    %26 = tpu.matmul %16, %4, %cst_17 {dimension_numbers = #tpu.dot_dimension_numbers<[1], [0], [0], [1], [0, 0, 1, 1], [], []>, precision = #tpu.contract_precision<fp32>} : vector<8x8xf32>, vector<8x32xf32>, vector<8x32xf32> -> vector<8x32xf32>
    %27 = arith.addf %25, %26 : vector<8x32xf32>
    %c0_18 = arith.constant 0 : index
    %c0_19 = arith.constant 0 : index
    %28 = vector.load %arg7[%c0_18, %c0_19] : memref<8x32xf32, #tpu.memory_space<vmem>>, vector<8x32xf32>
    tpu.vector_store %arg7[%c0_18, %c0_19], %27 {strides = array<i32>} : memref<8x32xf32, #tpu.memory_space<vmem>>, vector<8x32xf32>,
    %c0_20 = arith.constant 0 : index
    %c0_21 = arith.constant 0 : index
    %29 = vector.load %arg5[%c0_20, %c0_21] : memref<8x1xf32, #tpu.memory_space<vmem>>, vector<8x1xf32>
    tpu.vector_store %arg5[%c0_20, %c0_21], %10 {strides = array<i32>} : memref<8x1xf32, #tpu.memory_space<vmem>>, vector<8x1xf32>,
    %c0_i32_22 = arith.constant 0 : i32
    %30 = arith.cmpi eq, %arg1, %c0_i32_22 : i32
    %31 = arith.extui %30 : i1 to i32
    %c0_i32_23 = arith.constant 0 : i32
    %32 = arith.cmpi ne, %31, %c0_i32_23 : i32
    scf.if %32 {
      %c0_24 = arith.constant 0 : index
      %c0_25 = arith.constant 0 : index
      %33 = vector.load %arg7[%c0_24, %c0_25] : memref<8x32xf32, #tpu.memory_space<vmem>>, vector<8x32xf32>
      %c0_26 = arith.constant 0 : index
      %c0_27 = arith.constant 0 : index
      %34 = vector.load %arg6[%c0_26, %c0_27] : memref<8x1xf32, #tpu.memory_space<vmem>>, vector<8x1xf32>
      %35 = vector.broadcast %34 : vector<8x1xf32> to vector<8x32xf32>
      %36 = arith.divf %33, %35 : vector<8x32xf32>
      %c0_28 = arith.constant 0 : index
      %c0_29 = arith.constant 0 : index
      %c0_30 = arith.constant 0 : index
      %37 = vector.load %arg4[%c0_28, %c0_29, %c0_30] : memref<1x8x32xf32, #tpu.memory_space<vmem>>, vector<1x8x32xf32>
      %38 = vector.shape_cast %37 : vector<1x8x32xf32> to vector<8x32xf32>
      %39 = vector.shape_cast %36 : vector<8x32xf32> to vector<1x8x32xf32>
      tpu.vector_store %arg4[%c0_28, %c0_29, %c0_30], %39 {strides = array<i32>} : memref<1x8x32xf32, #tpu.memory_space<vmem>>, vector<1x8x32xf32>,
    } else {
    }
    return
  }
  func.func @transform_0(%arg0: i32, %arg1: i32) -> (i32, i32, i32) {
    %c0_i32 = arith.constant 0 : i32
    %c0_i32_0 = arith.constant 0 : i32
    return %arg0, %arg1, %c0_i32 : i32, i32, i32
  }
  func.func @transform_1(%arg0: i32, %arg1: i32) -> (i32, i32) {
    %c0_i32 = arith.constant 0 : i32
    %c0_i32_0 = arith.constant 0 : i32
    %c0_i32_1 = arith.constant 0 : i32
    return %c0_i32, %c0_i32_0 : i32, i32
  }
  func.func @transform_2(%arg0: i32, %arg1: i32) -> (i32, i32, i32) {
    %c0_i32 = arith.constant 0 : i32
    %c0_i32_0 = arith.constant 0 : i32
    %c0_i32_1 = arith.constant 0 : i32
    return %arg0, %c0_i32, %c0_i32_0 : i32, i32, i32
  }
}

</mosaic_0001>

<bundles_post_ra>
// kernel: tpu_custom_call.1
= control target key start
LH: loop header
LB: loop body
LE: loop exit
PB: predicated region body
PF: predicated region fallthrough
CT: control target
= control target key end

     0   :  { %7 = vsyncpa [#allocation6], 0  ;;  %s1823_s0 = inlined_call_operand.hbm [shape: f32[2,8,32], index: 0, kind: input, shape index: {}]   ;;  %s1824_s1 = inlined_call_operand.hbm [shape: f32[8,32], index: 1, kind: input, shape index: {}]   ;;  %s1825_s2 = inlined_call_operand.hbm [shape: f32[2,8,32], index: 2, kind: output, shape index: {}]  }
   0x1   :  { %9 = vsyncpa [#allocation6 + $0x1], 0 }
   0x2   :  { %10 = vsyncpa [#allocation9], 0 }
   0x3   :  { %11 = vsyncpa [#allocation7], 0 }
   0x4   :  { %13 = vsyncpa [#allocation7 + $0x1], 0  ;;  %s1597_s9 = smov 0   ;;  %s1599_s10 = smov 0  }
   0x5   :  { %s1601_s11 = smov 0   ;;  %s1603_s12 = smov 0  }
   0x6   :  { %s1605_s13 = smov 0   ;;  %s1607_s14 = smov 0  }
   0x7 LB: > { %s1251_s15 = sadd.s32 4294967295, %s1573_s14   ;;  %s1252_s16 = sadd.s32 4294967294, %s1573_s14   ;;  %s1573_s14 = sphi %s1607_s14, %s19_s14   ;;  %s1569_s13 = sphi %s1605_s13, %s1842_s13   ;;  %s1565_s12 = sphi %s1603_s12, %s1841_s12   ;;  %s1561_s11 = sphi %s1601_s11, %s1840_s11   ;;  %s1557_s10 = sphi %s1599_s10, %s1839_s10   ;;  %s1553_s9 = sphi %s1597_s9, %s1838_s9  }
   0x8   : > { %p53_p0 = scmp.ne.s32.totalorder %s1557_s10, %s1553_s9  ;;  %p1631_p1 = scmp.eq.s32.totalorder %s1251_s15, 0 }
   0x9   : > { %p1635_p2 = scmp.eq.s32.totalorder %s1251_s15, 1  ;;  %p104_p3 = scmp.eq.s32.totalorder %s1252_s16, 1 }
   0xa   : > { %p1641_p4 = por %p1631_p1, %p53_p0  ;;  %p1253_p5 = scmp.ge.s32.totalorder %s1573_s14, 1 }
   0xb   : > { %p1646_p6 = por %p104_p3, %p53_p0  ;;  %p111_p7 = scmp.lt.s32.totalorder %s1573_s14, 3 }
   0xc   : > { %s1829_s19 = scalar_select %p1641_p4, 1, 0 }
   0xd   : > { %s1830_s20 = scalar_select %p1646_p6, 1, 0 }
   0xe   : > { %p1651_p8 = pnand %p1253_p5, %p111_p7  ;;  %s1575_s22 = smov [#allocation8]  }
   0xf   : > { %s124_s23 = sshll.u32 %s1575_s22, 4  ;;  %s31_s25 = sadd.s32 1, %s1569_s13  ;;  %s125_s23 = int_to_ptr.vmem [resolvable:$true] %s124_s23 }
  0x10   : > { %p1358_p10 = pneg %p1651_p8  ;;  %s40_s26 = sadd.s32 1, %s1561_s11 }
  0x11   : > { %p33_p12 = scmp.ge.s32.totalorder %s31_s25, 2  ;;  %s1446_s27 = scalar_lea.vmem %s125_s23, 128 }
  0x12   : > { %p1660_p11 = pnand %p1358_p10, %p1631_p1  ;;  %p1447_p0 = scmp.ne.s32.totalorder %s125_s23, %s1446_s27 }
  0x13   : > { %p1454_p7 = scmp.lt.s32.totalorder %s125_s23, %s125_s23  ;;  %p1455_p6 = scmp.lt.s32.totalorder %s1446_s27, %s1446_s27 }
  0x14   : > { %p1437_p13 = pneg %p1660_p11 }
  0x15   : > { %p1456_p9 = por %p1455_p6, %p1454_p7 }
  0x16   : > { %p1449_p3 = pnand %p1447_p0, %p1437_p13 }
  0x18   : > { %p1450_p5 = pneg %p1449_p3 }
  0x1a   : > { %p1457_p4 = pnand %p1456_p9, %p1450_p5 }
  0x1c   : > { %1460 = shalt.err (!%p1457_p4)
}
  0x1d   : > { %1361 = dma.hbm_to_vmem [thread:$0]  (!%p1660_p11), %s1824_s1, 128, %s125_s23, [#allocation9]  }
  0x1e   : > { %s1844_s25 = smov (%p33_p12, %s31_s25), 0  ;;  %p47_p6 = scmp.ne.s32.totalorder %s1561_s11, %s1557_s10 }
  0x1f   : > { %p48_p4 = scmp.eq.s32.totalorder %s1573_s14, 0  ;;  %s35_s30 = ssub.s32 %s1569_s13, %s1844_s25 }
  0x20   : > { %p1371_p9 = scmp.lt.s32.totalorder %s1573_s14, 2  ;;  %p38_p10 = scmp.eq.s32.totalorder %s35_s30, 0 }
  0x21   : > { %p49_p13 = por %p48_p4, %p47_p6  ;;  %p1683_p0 = por %p1635_p2, %p47_p6 }
  0x22   : > { %s135_s4 = sand.u32 1, %s1561_s11   ;;  %s1257_s7 = sshll.u32 %s1569_s13, 7 }
  0x23   : > { %s1689_s5 = scalar_select %p38_p10, %s1561_s11, %s40_s26  }
  0x24   : > { %s1256_s6 = sshll.u32 %s135_s4, 3  ;;  %s145_s16 = scalar_lea.hbm %s1823_s0, %s1257_s7 }
  0x25   : > { %s139_s22 = scalar_lea.vmem [#allocation5], %s1256_s6  ;;  %p1695_p11 = pnand %p1371_p9, %p49_p13 }
  0x26   : > { %s147_s23 = sshll.u32 %s139_s22, 4  ;;  %s136_s18 = scalar_lea.sflag [#allocation6], %s135_s4  ;;  %s148_s23 = int_to_ptr.vmem [resolvable:$true] %s147_s23 }
  0x27   : > { %p1463_p2 = pneg %p1695_p11  ;;  %s1474_s27 = scalar_lea.vmem %s148_s23, 128 }
  0x28   : > { %p1475_p12 = scmp.ne.s32.totalorder %s148_s23, %s1474_s27  ;;  %s1576_s26 = smov [#allocation5]  }
  0x29   : > { %s1479_s28 = sshll.u32 %s1576_s26, 4  ;;  %s1480_s28 = int_to_ptr.vmem [resolvable:$false] %s1479_s28 }
  0x2a   : > { %p1477_p3 = pnand %p1475_p12, %p1463_p2  ;;  %s1481_s29 = scalar_lea.vmem %s1480_s28, 256 }
  0x2b   : > { %p1482_p7 = scmp.lt.s32.totalorder %s148_s23, %s1480_s28  ;;  %p1483_p6 = scmp.lt.s32.totalorder %s1481_s29, %s1474_s27 }
  0x2c   : > { %p1478_p5 = pneg %p1477_p3 }
  0x2d   : > { %p1484_p4 = por %p1483_p6, %p1482_p7 }
  0x2f   : > { %p1485_p10 = pnand %p1484_p4, %p1478_p5 }
  0x31   : > { %1488 = shalt.err (!%p1485_p10)
}
  0x32   : > { %1365 = dma.hbm_to_vmem [thread:$0]  (!%p1695_p11), %s145_s16, 128, %s148_s23, %s136_s18  }
  0x33   : > { %156 = sbr.rel (%p1651_p8) target bundleno = 864 (0x360), region = 28  ;;  %s1706_s30 = sand.u32 (!%p1651_p8), 1, %s1557_s10  }
  0x34   : > { %s1259_s4 = sshll.u32 (!%p1651_p8), %s1706_s30, 3  ;;  %s159_s6 = scalar_lea.sflag (!%p1651_p8), [#allocation6], %s1706_s30 }
  0x35   : > { %s162_s7 = scalar_lea.vmem (!%p1651_p8), [#allocation5], %s1259_s4  ;;  %p1835_p9 = scmp.ne.s32.totalorder (!%p1651_p8), %s1829_s19, 0 }
  0x38   : > { %1540 = dma.done.wait (%p1835_p9), %s159_s6, 128  }
  0x39   : > { %1542 = vsyncadd (%p1835_p9), %s159_s6, 4294967168 }
  0x3a   : > { %1544 = dma.done.wait (%p1631_p1), [#allocation9], 128  }
  0x3b   : > { %1546 = vsyncadd (%p1631_p1), [#allocation9], 4294967168  ;;  %vm194_vm0 = vcmask 261120   ;;  %v1577_v0 = vmov 0.0   ;;  %vm1578_vm1 = vmmov 0   ;;  %v1728_v1 = vld [vmem:[%s162_s7] sm:$0xff] }
  0x3c   : > { %1290 = vmatprep.subr.mxu0 %v1577_v0  ;;  %195 = vst.msk [vmem:[#allocation4] sm:$0xff] %vm194_vm0, %v1577_v0  ;;  %1292 = vmatprep.mubr.msk.f32.mxu0 %vm1578_vm1, %v1577_v0  ;;  %v197_v2 = vld [vmem:[#allocation8] sm:$0xff]  ;;  %v203_v3 = vsel %vm194_vm0, %v1728_v1, 0  ;;  %v1745_v15 = vand.u32 4294901760, %v1728_v1  ;;  %vm191_vm2 = vcmask 7168   ;;  %v1579_v16 = vmov -inf  }
  0x3d   : > { %1295 = vmatprep.subr.mxu1 %v1577_v0  ;;  %1297 = vmatprep.mubr.msk.f32.mxu1 %vm1578_vm1, %v1577_v0  ;;  %v200_v4 = vsel %vm194_vm0, %v197_v2, 0  ;;  %v236_v5 = vand.u32 4294901760, %v203_v3  ;;  %192 = vst.msk [vmem:[#allocation2] sm:$0xff] %vm191_vm2, %v1579_v16  ;;  %193 = vst.msk [vmem:[#allocation3] sm:$0xff] %vm191_vm2, %v1577_v0  ;;  %vm651_vm3 = vcmask 64512   ;;  %v1580_v35 = vmov 0  }
  0x3e   : > { %v271_v6 = vand.u32 4294901760, %v200_v4  ;;  %1427 = vset.pattern.permute.xlu0 %v1580_v35  ;;  %1428 = vset.pattern.permute.xlu1 %v1580_v35  ;;  %v794_v40 = vsub.f32 %v1728_v1, %v1745_v15  ;;  %s1263_s17 = sshll.u32 %s1565_s12, 7  ;;  %s186_s19 = scalar_lea.vmem [#allocation10], %s1259_s4 }
  0x3f   : > { %1291 = vmatpush3.xpose.msra.mxu0 %v236_v5  ;;  %v313_v8 = vsub.f32 %v203_v3, %v236_v5  ;;  %s1162_s21 = sshll.u32 %s186_s19, 4  ;;  %s1160_s16 = scalar_lea.hbm %s1825_s2, %s1263_s17  ;;  %s1163_s21 = int_to_ptr.vmem [resolvable:$true] %s1162_s21 }
  0x40   : > { %v272_v7 = vsub.f32 %v200_v4, %v271_v6  ;;  %1300 = vmatprep.subr.mxu0 %v1577_v0  ;;  %v795_v41 = vand.u32 4294901760, %v794_v40  ;;  %s1149_s22 = scalar_lea.sflag [#allocation7], %s1706_s30  ;;  %s1489_s23 = scalar_lea.vmem %s1163_s21, 128 }
  0x41   : > { %v314_v10 = vand.u32 4294901760, %v313_v8  ;;  %p1490_p1 = scmp.ne.s32.totalorder %s1163_s21, %s1489_s23  ;;  %s1581_s12 = smov [#allocation10]  }
  0x42   : > { %v273_v9 = vand.u32 4294901760, %v272_v7  ;;  %v796_v42 = vsub.f32 %v794_v40, %v795_v41  ;;  %s1493_s24 = sshll.u32 %s1581_s12, 4  ;;  %s1494_s24 = int_to_ptr.vmem [resolvable:$false] %s1493_s24 }
  0x43   : > { %v315_v12 = vsub.f32 %v313_v8, %v314_v10  ;;  %v676_v16 = vld [vmem:[#allocation4] sm:$0xff]  ;;  %p1491_p8 = pnand %p1490_p1, %p1683_p0  ;;  %s1495_s18 = scalar_lea.vmem %s1494_s24, 256 }
  0x44   : > { %v274_v11 = vsub.f32 %v272_v7, %v273_v9  ;;  %v655_v36 = vld [vmem:[#allocation2] sm:$0xff]  ;;  %v797_v43 = vand.u32 4294901760, %v796_v42  ;;  %v668_v57 = vld [vmem:[#allocation3] sm:$0xff]  ;;  %p1496_p11 = scmp.lt.s32.totalorder %s1163_s21, %s1494_s24  ;;  %p1497_p2 = scmp.lt.s32.totalorder %s1495_s18, %s1489_s23 }
  0x45   : > { %v316_v14 = vand.u32 4294901760, %v315_v12  ;;  %p1492_p13 = pneg %p1491_p8 }
  0x46   : > { %v275_v13 = vand.u32 4294901760, %v274_v11  ;;  %p1498_p12 = por %p1497_p2, %p1496_p11 }
  0x47   : > { %1296 = vmatpush3.xpose.msra.mxu1 %v316_v14 }
  0x48   : > { %1293 = vmatmul.mubr.f32.vlgmr.msra.gmra.mxu0 %v275_v13  ;;  %1305 = vmatprep.subr.mxu1 %v1577_v0  ;;  %p1499_p3 = pnand %p1498_p12, %p1492_p13 }
  0x49   : > { %1301 = vmatpush3.xpose.msra.mxu0 %v313_v8  ;;  %1302 = vmatprep.mubr.msk.f32.mxu0 %vm1578_vm1, %v1577_v0 }
  0x4a   : > { %1310 = vmatprep.subr.mxu0 %v1577_v0  ;;  %1298 = vmatmul.mubr.f32.vlgmr.msra.gmra.mxu1 %v271_v6 }
  0x4b   : > { %1306 = vmatpush3.xpose.msra.mxu1 %v236_v5  ;;  %1307 = vmatprep.mubr.msk.f32.mxu1 %vm1578_vm1, %v1577_v0 }
  0x4c   : > { %1303 = vmatmul.mubr.f32.vlgmr.msra.gmra.mxu0 %v272_v7  ;;  %1315 = vmatprep.subr.mxu1 %v1577_v0 }
  0x4d   : > { %1311 = vmatpush3.xpose.msra.mxu0 %v314_v10  ;;  %1312 = vmatprep.mubr.msk.f32.mxu0 %vm1578_vm1, %v1577_v0 }
  0x4e   : > { %1308 = vmatmul.mubr.f32.vlgmr.msra.gmra.mxu1 %v273_v9  ;;  %1320 = vmatprep.subr.mxu0 %v1577_v0 }
  0x4f   : > { %1316 = vmatpush3.xpose.msra.mxu1 %v236_v5  ;;  %1317 = vmatprep.mubr.msk.f32.mxu1 %vm1578_vm1, %v1577_v0 }
  0x50   : > { %1313 = vmatmul.mubr.f32.vlgmr.msra.gmra.mxu0 %v271_v6  ;;  %1325 = vmatprep.subr.mxu1 %v1577_v0 }
  0x51   : > { %1321 = vmatpush3.msra.mxu0 %v1745_v15  ;;  %1322 = vmatprep.mubr.msk.f32.mxu0 %vm1578_vm1, %v1577_v0 }
  0x52   : > { %1318 = vmatmul.mubr.f32.vlgmr.msra.gmra.mxu1 %v271_v6  ;;  %1330 = vmatprep.subr.mxu0 %v1577_v0 }
  0x53   : > { %1327 = vmatprep.mubr.msk.f32.mxu1 %vm1578_vm1, %v1577_v0  ;;  %1326 = vmatpush3.msra.mxu1 %v797_v43 }
  0x54   : > { %1335 = vmatprep.subr.mxu1 %v1577_v0 }
 0x108   : > { %v277_v17 = vpop.f32.mrf.mxu0 }
 0x10a   : > { %v1294_v18 = vpop.f32.mrf.mxu0  ;;  %v353_v19 = vpop.f32.mrf.mxu1 }
 0x10b   : > { %v354_v20 = vadd.f32 %v353_v19, %v277_v17 }
 0x10c   : > { %v427_v21 = vpop.f32.mrf.mxu0  ;;  %v1299_v22 = vpop.f32.mrf.mxu1 }
 0x10d   : > { %v428_v23 = vadd.f32 %v427_v21, %v354_v20 }
 0x10e   : > { %v1304_v24 = vpop.f32.mrf.mxu0  ;;  %v501_v25 = vpop.f32.mrf.mxu1 }
 0x10f   : > { %v502_v26 = vadd.f32 %v501_v25, %v428_v23 }
 0x110   : > { %v575_v27 = vpop.f32.mrf.mxu0  ;;  %v1309_v28 = vpop.f32.mrf.mxu1 }
 0x111   : > { %v576_v29 = vadd.f32 %v575_v27, %v502_v26 }
 0x112   : > { %v1314_v30 = vpop.f32.mrf.mxu0  ;;  %v647_v31 = vpop.f32.mrf.mxu1 }
 0x113   : > { %v648_v32 = vadd.f32 %v647_v31, %v576_v29 }
 0x114   : > { %v1319_v33 = vpop.f32.mrf.mxu1 }
 0x115   : > { %v652_v34 = vsel %vm651_vm3, %v648_v32, -inf }
 0x116   : > { %653 = vmax.xlane.f32.xlu0 %v652_v34 }
 0x19f   : > { %v654_v37 = vpop.xlane.xlu0 %653 }
 0x1a0   : > { %v656_v38 = vmax.f32 %v655_v36, %v654_v37 }
 0x1a2   : > { %v657_v39 = vsub.f32 %v655_v36, %v656_v38  ;;  %1134 = vst.msk [vmem:[#allocation2] sm:$0xff] %vm191_vm2, %v656_v38  ;;  %662 = vperm.xlu0 %1427, %v656_v38  }
 0x1a4   : > { %v658_v55 = vmul.f32 1.442695, %v657_v39 }
 0x21d   : > { %v663_v44 = vpop.permute.xlu0 %662 }
 0x21e   : > { %v665_v45 = vsub.f32 %v648_v32, %v663_v44 }
 0x220   : > { %v666_v46 = vmul.f32 1.442695, %v665_v45 }
 0x222   : > { %1429 = vpow2.f32 %v666_v46 }
 0x223   : > { %1431 = vpow2.f32 %v658_v55 }
 0x22f   : > { %v1430_v47 = vpop.eup %1429 }
 0x230   : > { %v670_v48 = vsel %vm651_vm3, %v1430_v47, 0.0  ;;  %v684_v49 = vsel %vm651_vm3, %v1430_v47, 0  ;;  %v1432_v56 = vpop.eup %1431 }
 0x231   : > { %671 = vadd.xlane.f32.xlu1 %v670_v48  ;;  %v752_v50 = vand.u32 4294901760, %v684_v49  ;;  %v669_v58 = vmul.f32 %v1432_v56, %v668_v57 }
 0x233   : > { %v753_v51 = vsub.f32 %v684_v49, %v752_v50  ;;  %1328 = vmatmul.mubr.f32.vlgmr.msra.gmra.mxu1 %v752_v50 }
 0x234   : > { %1336 = vmatpush3.msra.mxu1 %v1745_v15  ;;  %1337 = vmatprep.mubr.msk.f32.mxu1 %vm1578_vm1, %v1577_v0 }
 0x235   : > { %v754_v52 = vand.u32 4294901760, %v753_v51  ;;  %1345 = vmatprep.subr.mxu1 %v1577_v0 }
 0x237   : > { %1338 = vmatmul.mubr.f32.vlgmr.msra.gmra.mxu1 %v754_v52  ;;  %v755_v53 = vsub.f32 %v753_v51, %v754_v52 }
 0x238   : > { %1346 = vmatpush3.msra.mxu1 %v1745_v15  ;;  %1347 = vmatprep.mubr.msk.f32.mxu1 %vm1578_vm1, %v1577_v0 }
 0x239   : > { %v756_v54 = vand.u32 4294901760, %v755_v53 }
 0x23b   : > { %1323 = vmatmul.mubr.f32.vlgmr.msra.gmra.mxu0 %v756_v54  ;;  %1348 = vmatmul.mubr.f32.vlgmr.msra.gmra.mxu1 %v752_v50 }
 0x23c   : > { %1331 = vmatpush3.msra.mxu0 %v794_v40  ;;  %1332 = vmatprep.mubr.msk.f32.mxu0 %vm1578_vm1, %v1577_v0 }
 0x23d   : > { %1340 = vmatprep.subr.mxu0 %v1577_v0 }
 0x23f   : > { %1333 = vmatmul.mubr.f32.vlgmr.msra.gmra.mxu0 %v753_v51 }
 0x240   : > { %1341 = vmatpush3.msra.mxu0 %v795_v41  ;;  %1342 = vmatprep.mubr.msk.f32.mxu0 %vm1578_vm1, %v1577_v0 }
 0x243   : > { %1343 = vmatmul.mubr.f32.vlgmr.msra.gmra.mxu0 %v752_v50 }
 0x2ba   : > { %v672_v59 = vpop.xlane.xlu1 %671 }
 0x2bb   : > { %v673_v60 = vadd.f32 %v672_v59, %v669_v58 }
 0x2bd   : > { %675 = vst.msk [vmem:[#allocation3] sm:$0xff] %vm191_vm2, %v673_v60 }
 0x2c4   : > { %v1139_v61 = vld [vmem:[#allocation3] sm:$0xff] }
 0x2c5   : > { %1142 = vperm.xlu1 %1428, %v1139_v61  }
 0x2c9   : > { %679 = vperm.xlu1 %1428, %v1432_v56  }
 0x2f3   : > { %v834_v62 = vpop.f32.mrf.mxu1 }
 0x2f5   : > { %v1329_v63 = vpop.f32.mrf.mxu1 }
 0x2f7   : > { %v982_v1 = vpop.f32.mrf.mxu1 }
 0x2f9   : > { %v1339_v2 = vpop.f32.mrf.mxu1 }
 0x2fb   : > { %v758_v3 = vpop.f32.mrf.mxu0  ;;  %v1128_v4 = vpop.f32.mrf.mxu1 }
 0x2fc   : > { %v835_v0 = vadd.f32 %v834_v62, %v758_v3 }
 0x2fd   : > { %v1324_v5 = vpop.f32.mrf.mxu0  ;;  %v1349_v6 = vpop.f32.mrf.mxu1 }
 0x2ff   : > { %v908_v7 = vpop.f32.mrf.mxu0 }
 0x300   : > { %v909_v8 = vadd.f32 %v908_v7, %v835_v0 }
 0x301   : > { %v1334_v9 = vpop.f32.mrf.mxu0 }
 0x302   : > { %v983_v10 = vadd.f32 %v982_v1, %v909_v8 }
 0x303   : > { %v1056_v11 = vpop.f32.mrf.mxu0 }
 0x304   : > { %v1057_v12 = vadd.f32 %v1056_v11, %v983_v10 }
 0x305   : > { %v1344_v13 = vpop.f32.mrf.mxu0 }
 0x306   : > { %v1129_v14 = vadd.f32 %v1128_v4, %v1057_v12 }
 0x340   : > { %v1143_v15 = vpop.permute.xlu1 %1142 }
 0x341   : > { %1433 = vrcp.f32 %v1143_v15 }
 0x344   : > { %v680_v17 = vpop.permute.xlu1 %679 }
 0x345   : > { %v682_v18 = vmul.f32 %v680_v17, %v676_v16 }
 0x347   : > { %v1132_v19 = vadd.f32 %v1129_v14, %v682_v18 }
 0x349   : > { %1133 = vst.msk [vmem:[#allocation4] sm:$0xff] %vm194_vm0, %v1132_v19 }
 0x34e   : > { %v1434_v20 = vpop.eup %1433 }
 0x350   : > { %v1138_v21 = vld [vmem:[#allocation4] sm:$0xff] }
 0x351   : > { %v1146_v22 = vmul.f32 %v1434_v20, %v1138_v21 }
 0x353   : > { %1147 = vst.msk [vmem:[%s186_s19] sm:$0xff] %vm194_vm0, %v1146_v22 }
 0x354   : > { %1502 = shalt.err (!%p1499_p3)
}
 0x355   : > { %s1503_s27 = scalar_lea.hbm %s1160_s16, 128  ;;  %s1507_s29 = scalar_lea.hbm %s1825_s2, 256 }
 0x356   : > { %p1504_p5 = scmp.ne.s32.totalorder %s1160_s16, %s1503_s27  ;;  %p1508_p4 = scmp.lt.s32.totalorder %s1160_s16, %s1825_s2 }
 0x357   : > { %p1509_p10 = scmp.lt.s32.totalorder %s1507_s29, %s1503_s27 }
 0x358   : > { %p1505_p7 = pnand %p1504_p5, %p1683_p0 }
 0x359   : > { %p1510_p9 = por %p1509_p10, %p1508_p4 }
 0x35a   : > { %p1506_p6 = pneg %p1505_p7 }
 0x35c   : > { %p1511_p1 = pnand %p1510_p9, %p1506_p6 }
 0x35e   : > { %1514 = shalt.err (!%p1511_p1)
}
 0x35f   : > { %1356 = dma.vmem_to_hbm [thread:$0]  (%p1683_p0), %s1163_s21, 128, %s1160_s16, %s1149_s22  }
 0x360 PF: > { %s1174_s6 = sand.u32 1, %s1553_s9   ;;  %p1836_p8 = scmp.ne.s32.totalorder %s1830_s20, 0 }
 0x361   : > { %p1837_p13 = scmp.ge.s32.totalorder %s1573_s14, 2  ;;  %s1175_s7 = scalar_lea.sflag [#allocation7], %s1174_s6 }
 0x363   : > { %p1367_p11 = pnand %p1837_p13, %p1836_p8 }
 0x365   : > { %p1368_p2 = pneg %p1367_p11 }
 0x367   : > { %1548 = dma.done.wait (%p1368_p2), %s1175_s7, 128  }
 0x368   : > { %1550 = vsyncadd (%p1368_p2), %s1175_s7, 4294967168  ;;  %s19_s14 = sadd.s32 1, %s1573_s14   ;;  %s1838_s9 = smov %s1557_s10 }
 0x369   : > { %p16_p12 = scmp.ge.s32.totalorder %s19_s14, 4   ;;  %s1839_s10 = smov %s1561_s11 }
 0x36a   : > { %s1840_s11 = smov %s1689_s5  ;;  %s1841_s12 = smov %s1569_s13 }
 0x36b   : > { %s1842_s13 = smov %s1844_s25  ;;  %18 = sbr.rel (!%p16_p12) target bundleno = 7 (0x7), region = 85 }
 0x370   :  { %1180 = vsyncpa [#allocation6], 1 }
 0x371   :  { %1182 = vsyncpa [#allocation6 + $0x1], 1 }
 0x372   :  { %1183 = vsyncpa [#allocation9], 1 }
 0x373   :  { %1184 = vsyncpa [#allocation7], 1 }
 0x374   :  { %1186 = vsyncpa [#allocation7 + $0x1], 1 }

</bundles_post_ra>
